<compile_context>
chip_gen: v5e
topology: v5e:2x2
jax: 0.10.0
libtpu: 0.0.40
codegen_flags: <defaults>
</compile_context>

<pallas_src>
import numpy as np
import jax
import jax.numpy as jnp
from jax.experimental import pallas as pl
from jax.experimental.pallas import tpu as pltpu

# ---- hyper-parameters; SAGEConv(50, 1) fixes embedding_size = 34 -------------
EMBEDDING_SIZE = 34          # weekday embedding size
N_FEATURES = 2
STOP_EMBEDDING_SIZE = 12
NWEEKDAYS = 7
BASE_DIM = EMBEDDING_SIZE + N_FEATURES + STOP_EMBEDDING_SIZE     # 48
GNN_IN = BASE_DIM + 1 + 1                                        # 50 == SAGEConv in_channels


def gnn_attention_kernel(p_ref, x_ref, c_ref, dist_ref, a_ref, mask_ref, out_ref):
    """One grid step processes TB graphs, node axis lane-major.

    p_ref   : SMEM f32[lookback + 4] = [w1_0..w1_{L-1}, wl48, wl49, wr48, wr49]
    x_ref   : (TB, lookback, nnodes)   c_ref: (TB, 2) = [cl | cr]
    dist_ref: (1, nnodes)              a_ref: (TB, nnodes, nnodes)
    mask_ref/out_ref: (TB, nnodes)
    """
    lookback = x_ref.shape[1]
    xb = x_ref[...]                                    # (TB, L, nnodes)

    # fc1 (bias folded into cl/cr) as a VPU multiply-accumulate over the lookback axis:
    # xw1[b, n] = sum_l x[b, l, n] * w1[l]             -> (TB, nnodes), lane-major
    xw1 = xb[:, 0, :] * p_ref[0]
    for l in range(1, lookback):                       # static, tiny unrolled loop
        xw1 = xw1 + xb[:, l, :] * p_ref[l]

    wl48 = p_ref[lookback + 0]
    wl49 = p_ref[lookback + 1]
    wr48 = p_ref[lookback + 2]
    wr49 = p_ref[lookback + 3]

    dist = dist_ref[...]                               # (1, nnodes) -> broadcasts over TB
    cb = c_ref[...]                                    # (TB, 2)
    cl = cb[:, 0:1]                                    # (TB, 1)
    cr = cb[:, 1:2]

    # Per-node projections of the 50-wide features onto lin_l / lin_r (fully fused).
    v_l = cl + xw1 * wl48 + dist * wl49                # (TB, nnodes)
    v_r = cr + xw1 * wr48 + dist * wr49                # (TB, nnodes)

    # SAGEConv mean aggregation, already projected to 1 channel:
    # s[b, i] = sum_j A[b, i, j] * v_l[b, j] + v_r[b, i]
    s = jnp.sum(a_ref[...] * v_l[:, None, :], axis=-1) + v_r      # (TB, nnodes)

    # LogSoftmax over the node (lane) axis, then masked_fill(mask, -1e8)
    m = jnp.max(s, axis=-1, keepdims=True)
    logp = s - (m + jnp.log(jnp.sum(jnp.exp(s - m), axis=-1, keepdims=True)))
    out_ref[...] = jnp.where(mask_ref[...] != 0, jnp.float32(-1e8), logp)


def build_mean_agg_matrix(stops, nnodes):
    """A[b, i, j] = (#edges j->i in trajectory b) / in_degree(i); 0 if no in-edges.

    Host-side equivalent of torch_geometric's Data/Batch + SAGEConv mean scatter.
    Should be cached per batch outside any hot loop.
    """
    A = np.zeros((len(stops), nnodes, nnodes), dtype=np.float32)
    for b, traj in enumerate(stops):
        t = np.asarray(traj, dtype=np.int64)
        if t.size >= 2:
            np.add.at(A[b], (t[1:], t[:-1]), 1.0)
    deg = A.sum(axis=2, keepdims=True)
    return np.where(deg > 0, A / np.maximum(deg, 1.0), 0.0).astype(np.float32)


def _pick_tb(n_rows, nnodes, lookback, vmem_budget_bytes=24 << 20):
    """Largest multiple-of-8 graphs/step that keeps double-buffered blocks in VMEM."""
    per_graph = 4 * (nnodes * nnodes + lookback * nnodes + 3 * nnodes + 2) * 2
    cap = max(8, (vmem_budget_bytes // max(per_graph, 1)) // 8 * 8)
    cap = min(cap, 64)                           # keep >=2 steps for megacore sharding
    n_pad8 = -(-n_rows // 8) * 8
    return min(cap, n_pad8)


def gnn_attention_forward(params, stops, x, x_dist, x_features, x_week, x_mask):
    x = jnp.asarray(x, jnp.float32)
    n_rows, lookback, nnodes = x.shape

    # ---------------- glue: embeddings / per-graph constants / graph -> A -----
    x_emb = params["emb"][jnp.asarray(x_week)]                               # (n, 34)
    x_embed = jnp.stack(
        [params["stop_emb"][jnp.asarray(s)].sum(0) for s in stops])          # (n, 12)
    base = jnp.concatenate(
        [x_emb, jnp.asarray(x_features, jnp.float32), x_embed], axis=1)      # (n, 48)

    wl = params["wl"][:, 0]                                                  # (50,)
    wr = params["wr"][:, 0]
    b1 = params["b1"][0, 0]
    bl = params["bl"][0, 0]
    # Fold the per-graph constant part of feat (base rows) + both biases into 2 scalars.
    cl = base @ wl[:BASE_DIM] + b1 * wl[BASE_DIM]                            # (n,)
    cr = base @ wr[:BASE_DIM] + b1 * wr[BASE_DIM] + bl                       # (n,)
    c = jnp.stack([cl, cr], axis=1).astype(jnp.float32)                      # (n, 2)

    # Tiny scalar params -> one SMEM vector.
    p = jnp.concatenate(
        [params["w1t"][:, 0],
         jnp.stack([wl[BASE_DIM], wl[BASE_DIM + 1],
                    wr[BASE_DIM], wr[BASE_DIM + 1]])]).astype(jnp.float32)   # (L + 4,)

    A = jnp.asarray(build_mean_agg_matrix(stops, nnodes))                    # (n, nn, nn)
    dist_row = jnp.asarray(x_dist, jnp.float32).reshape(1, nnodes)           # (1, nnodes)
    mask = jnp.asarray(x_mask, jnp.int32)                                    # (n, nnodes)

    # Pad the batch to a multiple of tb (keeps block second-minor dims 8-aligned;
    # padded rows are independent garbage and sliced off).
    tb = _pick_tb(n_rows, nnodes, lookback)
    n_pad = -(-n_rows // tb) * tb
    pad = n_pad - n_rows
    if pad:
        x = jnp.pad(x, ((0, pad), (0, 0), (0, 0)))
        c = jnp.pad(c, ((0, pad), (0, 0)))
        A = jnp.pad(A, ((0, pad), (0, 0), (0, 0)))
        mask = jnp.pad(mask, ((0, pad), (0, 0)))

    out = pl.pallas_call(
        gnn_attention_kernel,
        out_shape=jax.ShapeDtypeStruct((n_pad, nnodes), jnp.float32),
        grid=(n_pad // tb,),
        in_specs=[
            pl.BlockSpec(memory_space=pltpu.MemorySpace.SMEM),               # scalar params
            pl.BlockSpec((tb, lookback, nnodes), lambda b: (b, 0, 0)),       # x
            pl.BlockSpec((tb, 2), lambda b: (b, 0)),                         # [cl | cr]
            pl.BlockSpec((1, nnodes), lambda b: (0, 0)),                     # dist row
            pl.BlockSpec((tb, nnodes, nnodes), lambda b: (b, 0, 0)),         # agg matrix A
            pl.BlockSpec((tb, nnodes), lambda b: (b, 0)),                    # mask
        ],
        out_specs=pl.BlockSpec((tb, nnodes), lambda b: (b, 0)),
        compiler_params=pltpu.CompilerParams(dimension_semantics=("parallel",)),
    )(p, x, c, dist_row, A, mask)
    return out[:n_rows]                                                      # (n, nnodes)


def reference_forward(params, stops, x, x_dist, x_features, x_week, x_mask):
    """Pure-JAX reference reproducing the PyTorch forward (sanity check)."""
    x = jnp.asarray(x, jnp.float32)
    n_rows, lookback, nnodes = x.shape
    x_emb = params["emb"][jnp.asarray(x_week)]
    x_embed = jnp.stack([params["stop_emb"][jnp.asarray(s)].sum(0) for s in stops])
    out1 = jnp.einsum("bln,l->bn", x, params["w1t"][:, 0]) + params["b1"][0, 0]
    base = jnp.concatenate([x_emb, jnp.asarray(x_features, jnp.float32), x_embed], axis=1)
    feat = jnp.concatenate(
        [jnp.broadcast_to(base[:, None, :], (n_rows, nnodes, BASE_DIM)),
         out1[:, :, None],
         jnp.broadcast_to(jnp.asarray(x_dist, jnp.float32)[None, :, None], (n_rows, nnodes, 1))],
        axis=-1)
    A = jnp.asarray(build_mean_agg_matrix(stops, nnodes))
    agg = jnp.einsum("bij,bjf->bif", A, feat)
    s = (agg @ params["wl"] + feat @ params["wr"] + params["bl"][0, 0])[:, :, 0]
    logp = jax.nn.log_softmax(s, axis=1)
    return jnp.where(jnp.asarray(x_mask).astype(bool), jnp.float32(-1e8), logp)


if __name__ == "__main__":
    nnodes, n_rows, lookback = 16, 4, 8

    key = jax.random.PRNGKey(0)
    ks = jax.random.split(key, 10)
    params = {
        "w1t": jax.random.normal(ks[0], (lookback, 1), jnp.float32) * 0.1,   # fc1.weight^T
        "b1": jax.random.normal(ks[1], (1, 1), jnp.float32) * 0.1,           # fc1.bias
        "emb": jax.random.normal(ks[2], (NWEEKDAYS, EMBEDDING_SIZE), jnp.float32) * 0.1,
        "stop_emb": jax.random.normal(ks[3], (nnodes, STOP_EMBEDDING_SIZE), jnp.float32) * 0.1,
        "wl": jax.random.normal(ks[4], (GNN_IN, 1), jnp.float32) * 0.1,      # SAGE lin_l.weight^T
        "bl": jax.random.normal(ks[5], (1, 1), jnp.float32) * 0.1,           # SAGE lin_l.bias
        "wr": jax.random.normal(ks[6], (GNN_IN, 1), jnp.float32) * 0.1,      # SAGE lin_r.weight^T
    }

    # deterministic variable-length trajectories (python lists of node ids)
    rng = np.random.RandomState(0)
    stops = [list(rng.randint(0, nnodes, size=int(rng.randint(3, 8)))) for _ in range(n_rows)]

    x = jax.random.normal(ks[7], (n_rows, lookback, nnodes), jnp.float32)
    x_dist = jax.random.uniform(ks[8], (nnodes,), jnp.float32)
    x_features = jax.random.normal(ks[9], (n_rows, N_FEATURES), jnp.float32)
    x_week = jnp.array([0, 3, 5, 6], dtype=jnp.int32)
    x_mask = (jax.random.uniform(jax.random.PRNGKey(1), (n_rows, nnodes)) < 0.2).astype(jnp.int32)

    out = gnn_attention_forward(params, stops, x, x_dist, x_features, x_week, x_mask)
    out = jax.block_until_ready(out)

    ref = reference_forward(params, stops, x, x_dist, x_features, x_week, x_mask)
    np.testing.assert_allclose(np.asarray(out), np.asarray(ref), rtol=1e-4, atol=1e-4)

    print("KERNEL_OK")
</pallas_src>

<mosaic_0001>
module attributes {stable_mosaic.version = 11 : i64} {
  func.func @gnn_attention_kernel(%arg0: i32, %arg1: memref<12xf32, #tpu.memory_space<smem>>, %arg2: memref<8x8x16xf32, #tpu.memory_space<vmem>>, %arg3: memref<8x2xf32, #tpu.memory_space<vmem>>, %arg4: memref<1x16xf32, #tpu.memory_space<vmem>>, %arg5: memref<8x16x16xf32, #tpu.memory_space<vmem>>, %arg6: memref<8x16xi32, #tpu.memory_space<vmem>>, %arg7: memref<8x16xf32, #tpu.memory_space<vmem>>) attributes {dimension_semantics = [#tpu.dimension_semantics<parallel>], iteration_bounds = array<i64: 1>, scalar_prefetch = 0 : i64, scratch_operands = 0 : i64, tpu.core_type = #tpu.core_type<tc>, window_params = [{transform_indices = @transform_0, window_bounds = array<i64: 12>}, {transform_indices = @transform_1, window_bounds = array<i64: 8, 8, 16>}, {transform_indices = @transform_2, window_bounds = array<i64: 8, 2>}, {pipeline_mode = #tpu.pipeline_mode<synchronous>, transform_indices = @transform_3, window_bounds = array<i64: 1, 16>}, {transform_indices = @transform_4, window_bounds = array<i64: 8, 16, 16>}, {transform_indices = @transform_5, window_bounds = array<i64: 8, 16>}, {transform_indices = @transform_6, window_bounds = array<i64: 8, 16>}]} {
    %c0 = arith.constant 0 : index
    %c0_0 = arith.constant 0 : index
    %c0_1 = arith.constant 0 : index
    %0 = vector.load %arg2[%c0, %c0_0, %c0_1] : memref<8x8x16xf32, #tpu.memory_space<vmem>>, vector<8x8x16xf32>
    %1 = vector.extract_strided_slice %0 {offsets = [0, 0, 0], sizes = [8, 1, 16], strides = [1, 1, 1]} : vector<8x8x16xf32> to vector<8x1x16xf32>
    %2 = vector.shape_cast %1 : vector<8x1x16xf32> to vector<8x16xf32>
    %c0_2 = arith.constant 0 : index
    %3 = memref.load %arg1[%c0_2] : memref<12xf32, #tpu.memory_space<smem>>
    %4 = vector.broadcast %3 : f32 to vector<8x16xf32>
    %5 = arith.mulf %2, %4 : vector<8x16xf32>
    %6 = vector.extract_strided_slice %0 {offsets = [0, 1, 0], sizes = [8, 1, 16], strides = [1, 1, 1]} : vector<8x8x16xf32> to vector<8x1x16xf32>
    %7 = vector.shape_cast %6 : vector<8x1x16xf32> to vector<8x16xf32>
    %c1 = arith.constant 1 : index
    %8 = memref.load %arg1[%c1] : memref<12xf32, #tpu.memory_space<smem>>
    %9 = vector.broadcast %8 : f32 to vector<8x16xf32>
    %10 = arith.mulf %7, %9 : vector<8x16xf32>
    %11 = arith.addf %5, %10 : vector<8x16xf32>
    %12 = vector.extract_strided_slice %0 {offsets = [0, 2, 0], sizes = [8, 1, 16], strides = [1, 1, 1]} : vector<8x8x16xf32> to vector<8x1x16xf32>
    %13 = vector.shape_cast %12 : vector<8x1x16xf32> to vector<8x16xf32>
    %c2 = arith.constant 2 : index
    %14 = memref.load %arg1[%c2] : memref<12xf32, #tpu.memory_space<smem>>
    %15 = vector.broadcast %14 : f32 to vector<8x16xf32>
    %16 = arith.mulf %13, %15 : vector<8x16xf32>
    %17 = arith.addf %11, %16 : vector<8x16xf32>
    %18 = vector.extract_strided_slice %0 {offsets = [0, 3, 0], sizes = [8, 1, 16], strides = [1, 1, 1]} : vector<8x8x16xf32> to vector<8x1x16xf32>
    %19 = vector.shape_cast %18 : vector<8x1x16xf32> to vector<8x16xf32>
    %c3 = arith.constant 3 : index
    %20 = memref.load %arg1[%c3] : memref<12xf32, #tpu.memory_space<smem>>
    %21 = vector.broadcast %20 : f32 to vector<8x16xf32>
    %22 = arith.mulf %19, %21 : vector<8x16xf32>
    %23 = arith.addf %17, %22 : vector<8x16xf32>
    %24 = vector.extract_strided_slice %0 {offsets = [0, 4, 0], sizes = [8, 1, 16], strides = [1, 1, 1]} : vector<8x8x16xf32> to vector<8x1x16xf32>
    %25 = vector.shape_cast %24 : vector<8x1x16xf32> to vector<8x16xf32>
    %c4 = arith.constant 4 : index
    %26 = memref.load %arg1[%c4] : memref<12xf32, #tpu.memory_space<smem>>
    %27 = vector.broadcast %26 : f32 to vector<8x16xf32>
    %28 = arith.mulf %25, %27 : vector<8x16xf32>
    %29 = arith.addf %23, %28 : vector<8x16xf32>
    %30 = vector.extract_strided_slice %0 {offsets = [0, 5, 0], sizes = [8, 1, 16], strides = [1, 1, 1]} : vector<8x8x16xf32> to vector<8x1x16xf32>
    %31 = vector.shape_cast %30 : vector<8x1x16xf32> to vector<8x16xf32>
    %c5 = arith.constant 5 : index
    %32 = memref.load %arg1[%c5] : memref<12xf32, #tpu.memory_space<smem>>
    %33 = vector.broadcast %32 : f32 to vector<8x16xf32>
    %34 = arith.mulf %31, %33 : vector<8x16xf32>
    %35 = arith.addf %29, %34 : vector<8x16xf32>
    %36 = vector.extract_strided_slice %0 {offsets = [0, 6, 0], sizes = [8, 1, 16], strides = [1, 1, 1]} : vector<8x8x16xf32> to vector<8x1x16xf32>
    %37 = vector.shape_cast %36 : vector<8x1x16xf32> to vector<8x16xf32>
    %c6 = arith.constant 6 : index
    %38 = memref.load %arg1[%c6] : memref<12xf32, #tpu.memory_space<smem>>
    %39 = vector.broadcast %38 : f32 to vector<8x16xf32>
    %40 = arith.mulf %37, %39 : vector<8x16xf32>
    %41 = arith.addf %35, %40 : vector<8x16xf32>
    %42 = vector.extract_strided_slice %0 {offsets = [0, 7, 0], sizes = [8, 1, 16], strides = [1, 1, 1]} : vector<8x8x16xf32> to vector<8x1x16xf32>
    %43 = vector.shape_cast %42 : vector<8x1x16xf32> to vector<8x16xf32>
    %c7 = arith.constant 7 : index
    %44 = memref.load %arg1[%c7] : memref<12xf32, #tpu.memory_space<smem>>
    %45 = vector.broadcast %44 : f32 to vector<8x16xf32>
    %46 = arith.mulf %43, %45 : vector<8x16xf32>
    %47 = arith.addf %41, %46 : vector<8x16xf32>
    %c8 = arith.constant 8 : index
    %48 = memref.load %arg1[%c8] : memref<12xf32, #tpu.memory_space<smem>>
    %c9 = arith.constant 9 : index
    %49 = memref.load %arg1[%c9] : memref<12xf32, #tpu.memory_space<smem>>
    %c10 = arith.constant 10 : index
    %50 = memref.load %arg1[%c10] : memref<12xf32, #tpu.memory_space<smem>>
    %c11 = arith.constant 11 : index
    %51 = memref.load %arg1[%c11] : memref<12xf32, #tpu.memory_space<smem>>
    %c0_3 = arith.constant 0 : index
    %c0_4 = arith.constant 0 : index
    %52 = vector.load %arg4[%c0_3, %c0_4] : memref<1x16xf32, #tpu.memory_space<vmem>>, vector<1x16xf32>
    %c0_5 = arith.constant 0 : index
    %c0_6 = arith.constant 0 : index
    %53 = vector.load %arg3[%c0_5, %c0_6] : memref<8x2xf32, #tpu.memory_space<vmem>>, vector<8x2xf32>
    %54 = vector.extract_strided_slice %53 {offsets = [0, 0], sizes = [8, 1], strides = [1, 1]} : vector<8x2xf32> to vector<8x1xf32>
    %55 = vector.extract_strided_slice %53 {offsets = [0, 1], sizes = [8, 1], strides = [1, 1]} : vector<8x2xf32> to vector<8x1xf32>
    %56 = vector.broadcast %48 : f32 to vector<8x16xf32>
    %57 = arith.mulf %47, %56 : vector<8x16xf32>
    %58 = vector.broadcast %54 : vector<8x1xf32> to vector<8x16xf32>
    %59 = arith.addf %58, %57 : vector<8x16xf32>
    %60 = vector.broadcast %49 : f32 to vector<1x16xf32>
    %61 = arith.mulf %52, %60 : vector<1x16xf32>
    %62 = vector.broadcast %61 : vector<1x16xf32> to vector<8x16xf32>
    %63 = arith.addf %59, %62 : vector<8x16xf32>
    %64 = vector.broadcast %50 : f32 to vector<8x16xf32>
    %65 = arith.mulf %47, %64 : vector<8x16xf32>
    %66 = vector.broadcast %55 : vector<8x1xf32> to vector<8x16xf32>
    %67 = arith.addf %66, %65 : vector<8x16xf32>
    %68 = vector.broadcast %51 : f32 to vector<1x16xf32>
    %69 = arith.mulf %52, %68 : vector<1x16xf32>
    %70 = vector.broadcast %69 : vector<1x16xf32> to vector<8x16xf32>
    %71 = arith.addf %67, %70 : vector<8x16xf32>
    %c0_7 = arith.constant 0 : index
    %c0_8 = arith.constant 0 : index
    %c0_9 = arith.constant 0 : index
    %72 = vector.load %arg5[%c0_7, %c0_8, %c0_9] : memref<8x16x16xf32, #tpu.memory_space<vmem>>, vector<8x16x16xf32>
    %73 = vector.shape_cast %63 : vector<8x16xf32> to vector<8x1x16xf32>
    %74 = vector.broadcast %73 : vector<8x1x16xf32> to vector<8x16x16xf32>
    %75 = arith.mulf %72, %74 : vector<8x16x16xf32>
    %cst = arith.constant dense<0.000000e+00> : vector<8x16xf32>
    %76 = vector.multi_reduction <add>, %75, %cst [2] : vector<8x16x16xf32> to vector<8x16xf32>
    %77 = arith.addf %76, %71 : vector<8x16xf32>
    %cst_10 = arith.constant dense<0xFF800000> : vector<8xf32>
    %78 = vector.multi_reduction <maximumf>, %77, %cst_10 [1] : vector<8x16xf32> to vector<8xf32>
    %79 = vector.shape_cast %78 : vector<8xf32> to vector<8x1xf32>
    %80 = vector.broadcast %79 : vector<8x1xf32> to vector<8x16xf32>
    %81 = arith.subf %77, %80 : vector<8x16xf32>
    %82 = math.exp %81 : vector<8x16xf32>
    %cst_11 = arith.constant dense<0.000000e+00> : vector<8xf32>
    %83 = vector.multi_reduction <add>, %82, %cst_11 [1] : vector<8x16xf32> to vector<8xf32>
    %84 = vector.shape_cast %83 : vector<8xf32> to vector<8x1xf32>
    %85 = math.log %84 : vector<8x1xf32>
    %86 = arith.addf %79, %85 : vector<8x1xf32>
    %87 = vector.broadcast %86 : vector<8x1xf32> to vector<8x16xf32>
    %88 = arith.subf %77, %87 : vector<8x16xf32>
    %c0_12 = arith.constant 0 : index
    %c0_13 = arith.constant 0 : index
    %89 = vector.load %arg6[%c0_12, %c0_13] : memref<8x16xi32, #tpu.memory_space<vmem>>, vector<8x16xi32>
    %c0_i32 = arith.constant 0 : i32
    %90 = vector.broadcast %c0_i32 : i32 to vector<8x16xi32>
    %91 = arith.cmpi ne, %89, %90 : vector<8x16xi32>
    %cst_14 = arith.constant -1.000000e+08 : f32
    %92 = vector.broadcast %cst_14 : f32 to vector<8x16xf32>
    %93 = arith.select %91, %92, %88 : vector<8x16xi1>, vector<8x16xf32>
    %c0_15 = arith.constant 0 : index
    %c0_16 = arith.constant 0 : index
    %94 = vector.load %arg7[%c0_15, %c0_16] : memref<8x16xf32, #tpu.memory_space<vmem>>, vector<8x16xf32>
    tpu.vector_store %arg7[%c0_15, %c0_16], %93 {strides = array<i32>} : memref<8x16xf32, #tpu.memory_space<vmem>>, vector<8x16xf32>,
    return
  }
  func.func @transform_0(%arg0: i32) -> i32 {
    %c0_i32 = arith.constant 0 : i32
    %c0_i32_0 = arith.constant 0 : i32
    return %c0_i32 : i32
  }
  func.func @transform_1(%arg0: i32) -> (i32, i32, i32) {
    %c0_i32 = arith.constant 0 : i32
    %c0_i32_0 = arith.constant 0 : i32
    %c0_i32_1 = arith.constant 0 : i32
    return %arg0, %c0_i32, %c0_i32_0 : i32, i32, i32
  }
  func.func @transform_2(%arg0: i32) -> (i32, i32) {
    %c0_i32 = arith.constant 0 : i32
    %c0_i32_0 = arith.constant 0 : i32
    return %arg0, %c0_i32 : i32, i32
  }
  func.func @transform_3(%arg0: i32) -> (i32, i32) {
    %c0_i32 = arith.constant 0 : i32
    %c0_i32_0 = arith.constant 0 : i32
    %c0_i32_1 = arith.constant 0 : i32
    return %c0_i32, %c0_i32_0 : i32, i32
  }
  func.func @transform_4(%arg0: i32) -> (i32, i32, i32) {
    %c0_i32 = arith.constant 0 : i32
    %c0_i32_0 = arith.constant 0 : i32
    %c0_i32_1 = arith.constant 0 : i32
    return %arg0, %c0_i32, %c0_i32_0 : i32, i32, i32
  }
  func.func @transform_5(%arg0: i32) -> (i32, i32) {
    %c0_i32 = arith.constant 0 : i32
    %c0_i32_0 = arith.constant 0 : i32
    return %arg0, %c0_i32 : i32, i32
  }
  func.func @transform_6(%arg0: i32) -> (i32, i32) {
    %c0_i32 = arith.constant 0 : i32
    %c0_i32_0 = arith.constant 0 : i32
    return %arg0, %c0_i32 : i32, i32
  }
}

</mosaic_0001>

<bundles_post_ra>
// kernel: tpu_custom_call.1
= control target key start
LH: loop header
LB: loop body
LE: loop exit
PB: predicated region body
PF: predicated region fallthrough
CT: control target
= control target key end

     0   :  { %11 = vsyncpa [#allocation5], 0  ;;  %s1773_s0 = inlined_call_operand.vmem [shape: f32[12], index: 0, kind: input, shape index: {}]   ;;  %s1774_s1 = inlined_call_operand.hbm [shape: f32[8,8,16], index: 1, kind: input, shape index: {}]   ;;  %s1775_s2 = inlined_call_operand.vmem [shape: f32[8,2], index: 2, kind: input, shape index: {}]   ;;  %s1776_s3 = inlined_call_operand.vmem [shape: f32[1,16], index: 3, kind: input, shape index: {}]   ;;  %s1777_s4 = inlined_call_operand.hbm [shape: f32[8,16,16], index: 4, kind: input, shape index: {}]   ;;  %s1778_s5 = inlined_call_operand.vmem [shape: s32[8,16], index: 5, kind: input, shape index: {}]   ;;  %s1779_s6 = inlined_call_operand.hbm [shape: f32[8,16], index: 6, kind: output, shape index: {}]  }
   0x1   :  { %12 = vsyncpa [#allocation3], 0 }
   0x2   :  { %13 = vsyncpa [#allocation8], 0 }
   0x3   :  { %14 = vsyncpa [#allocation4], 0  ;;  %s20_s23 = sshll.u32 %s1773_s0, 4  ;;  %s28_s26 = sshll.u32 %s1774_s1, 4  ;;  %s21_s23 = int_to_ptr.vmem [resolvable:$true] %s20_s23  ;;  %s29_s26 = int_to_ptr.hbm [resolvable:$true] %s28_s26 }
   0x4   :  { %s1305_s27 = smov [#allocation2]   ;;  %s1306_s28 = smov [#allocation6]  }
   0x5   :  { %23 = dma.vmem_to_smem %s21_s23, 16, %s1305_s27, [#allocation5]  }
   0x6   :  { %s30_s29 = sshll.u32 %s1306_s28, 4  ;;  %s1307_s30 = smov 128   ;;  %s31_s29 = int_to_ptr.vmem [resolvable:$true] %s30_s29 }
   0x7   :  { %s1308_s7 = smov 8   ;;  %s45_s10 = sshll.u32 %s1777_s4, 4  ;;  %s46_s10 = int_to_ptr.hbm [resolvable:$true] %s45_s10 }
   0x8   :  { %36 = dma.hbm_to_vmem [thread:$0]  %s29_s26, 1024, %s31_s29, [#allocation3], %s1307_s30, %s1307_s30, %s1308_s7  }
   0x9   :  { %s1309_s0 = smov [#allocation7]  }
   0xa   :  { %s47_s11 = sshll.u32 %s1309_s0, 4  ;;  %s48_s11 = int_to_ptr.vmem [resolvable:$true] %s47_s11 }
   0xb   :  { %53 = dma.hbm_to_vmem [thread:$0]  %s46_s10, 2048, %s48_s11, [#allocation8], %s1307_s30, %s1307_s30, %s1308_s7  }
   0xc   :  { %1297 = dma.done.wait [#allocation5], 16  }
   0xd   :  { %1298 = vsyncadd [#allocation5], 4294967280 }
   0xe   :  { %1299 = dma.done.wait [#allocation3], 1024  }
   0xf   :  { %1300 = vsyncadd [#allocation3], 4294966272 }
  0x10   :  { %1301 = dma.done.wait [#allocation8], 2048  }
  0x11   :  { %1302 = vsyncadd [#allocation8], 4294965248 }
  0x12   :  { %68 = sfence }
  0x13   :  { %v386_v0 = vld [vmem:[%s1775_s2] sm:$0xff]  ;;  %v1310_v1 = vmov 0   ;;  %v1311_v2 = vmov 1   ;;  %s1145_s4 = sld [smem:[#allocation2 + $0x1]]  ;;  %v1363_v4 = vld [vmem:[#allocation6 + $0x8] sm:$0xff]  ;;  %v1365_v5 = vld [vmem:[#allocation6 + $0x10] sm:$0xff] }
  0x14   :  { %1164 = vset.pattern.permute.xlu0 %v1310_v1  ;;  %s77_s13 = sld [smem:[#allocation2]]  ;;  %v1361_v3 = vld [vmem:[#allocation6] sm:$0xff]  ;;  %v1367_v7 = vld [vmem:[#allocation6 + $0x18] sm:$0xff]  ;;  %v1372_v10 = vld [vmem:[#allocation6 + $0x28] sm:$0xff]  ;;  %vm410_vm0 = vcmask 1041409   ;;  %vm413_vm1 = vcmask 1042434  }
  0x15   :  { %398 = vperm.xlu0 %1164, %v386_v0   ;;  %s1146_s14 = sld [smem:[#allocation2 + $0x2]]  ;;  %v1369_v8 = vld [vmem:[#allocation6 + $0x20] sm:$0xff]  ;;  %v1374_v11 = vld [vmem:[#allocation6 + $0x30] sm:$0xff]  ;;  %v1376_v12 = vld [vmem:[#allocation6 + $0x38] sm:$0xff]  ;;  %vm416_vm2 = vcmask 1043459   ;;  %vm419_vm3 = vcmask 1044484  }
  0x16   :  { %s1384_s2 = sld [smem:[#allocation2 + $0x3]]  ;;  %vm422_vm4 = vcmask 1045509   ;;  %vm425_vm5 = vcmask 1046534   ;;  %vm428_vm6 = vcmask 1047559   ;;  %vm537_vm7 = vcmask 130048   ;;  %s1312_s26 = smov [#allocation9]  }
  0x17   :  { %s1402_s15 = sld [smem:[#allocation2 + $0x4]]  ;;  %vm792_vm8 = vcmask 130112   ;;  %s1131_s27 = sshll.u32 %s1312_s26, 4  ;;  %s1132_s27 = int_to_ptr.vmem [resolvable:$true] %s1131_s27 }
  0x18   :  { %s1411_s16 = sld [smem:[#allocation2 + $0x5]]  ;;  %s1133_s30 = sshll.u32 %s1779_s6, 4  ;;  %s1134_s30 = int_to_ptr.hbm [resolvable:$true] %s1133_s30 }
  0x19   :  { %v88_v6 = vstv %s1145_s4  ;;  %s1423_s17 = sld [smem:[#allocation2 + $0x6]] }
  0x1a   :  { %v89_v9 = vmul.f32 %v88_v6, %v1361_v3  ;;  %v78_v13 = vstv %s77_s13  ;;  %v90_v14 = vmul.f32 %v88_v6, %v1363_v4  ;;  %v91_v15 = vmul.f32 %v88_v6, %v1365_v5  ;;  %s1428_s18 = sld [smem:[#allocation2 + $0x7]] }
  0x1b   :  { %v92_v16 = vmul.f32 %v88_v6, %v1367_v7  ;;  %v93_v17 = vmul.f32 %v88_v6, %v1369_v8  ;;  %v130_v18 = vstv %s1146_s14  ;;  %v79_v19 = vmul.f32 %v78_v13, %v1361_v3  ;;  %s1154_s19 = sld [smem:[#allocation2 + $0xa]] }
  0x1c   :  { %v94_v20 = vmul.f32 %v88_v6, %v1372_v10  ;;  %v105_v21 = vrot.slane %v89_v9, 1  ;;  %v80_v22 = vmul.f32 %v78_v13, %v1363_v4  ;;  %v95_v23 = vmul.f32 %v88_v6, %v1374_v11  ;;  %s1475_s20 = sld [smem:[#allocation2 + $0xb]] }
  0x1d   :  { %1165 = vset.pattern.permute.xlu0 %v1311_v2  ;;  %v96_v24 = vmul.f32 %v88_v6, %v1376_v12  ;;  %v81_v25 = vmul.f32 %v78_v13, %v1365_v5  ;;  %v106_v26 = vrot.slane %v90_v14, 1  ;;  %v107_v27 = vrot.slane %v91_v15, 1  ;;  %s1153_s23 = sld [smem:[#allocation2 + $0x9]] }
  0x1e   :  { %448 = vperm.xlu0 %1165, %v386_v0   ;;  %v132_v28 = vmul.f32 %v130_v18, %v1363_v4  ;;  %v82_v29 = vmul.f32 %v78_v13, %v1367_v7  ;;  %v83_v30 = vmul.f32 %v78_v13, %v1369_v8  ;;  %v108_v31 = vrot.slane %v92_v16, 1 }
  0x1f   :  { %v109_v32 = vrot.slane %v93_v17, 1  ;;  %v84_v33 = vmul.f32 %v78_v13, %v1372_v10  ;;  %v110_v34 = vrot.slane %v94_v20, 1  ;;  %v121_v35 = vadd.f32 %v105_v21, %v79_v19 }
  0x20   :  { %v131_v36 = vmul.f32 %v130_v18, %v1361_v3  ;;  %v85_v37 = vmul.f32 %v78_v13, %v1374_v11  ;;  %v86_v38 = vmul.f32 %v78_v13, %v1376_v12  ;;  %v111_v39 = vrot.slane %v95_v23, 1 }
  0x21   :  { %v112_v40 = vrot.slane %v96_v24, 1  ;;  %v122_v41 = vadd.f32 %v106_v26, %v80_v22  ;;  %v133_v42 = vmul.f32 %v130_v18, %v1365_v5  ;;  %v134_v43 = vmul.f32 %v130_v18, %v1367_v7 }
  0x22   :  { %v135_v44 = vmul.f32 %v130_v18, %v1369_v8  ;;  %v123_v45 = vadd.f32 %v107_v27, %v81_v25  ;;  %v124_v46 = vadd.f32 %v108_v31, %v82_v29  ;;  %v136_v47 = vmul.f32 %v130_v18, %v1372_v10 }
  0x23   :  { %v137_v48 = vmul.f32 %v130_v18, %v1374_v11  ;;  %v125_v49 = vadd.f32 %v109_v32, %v83_v30  ;;  %v138_v50 = vmul.f32 %v130_v18, %v1376_v12  ;;  %v147_v51 = vrot.slane %v131_v36, 2 }
  0x24   :  { %v172_v52 = vstv %s1384_s2  ;;  %v126_v53 = vadd.f32 %v110_v34, %v84_v33  ;;  %v127_v54 = vadd.f32 %v111_v39, %v85_v37  ;;  %v128_v55 = vadd.f32 %v112_v40, %v86_v38 }
  0x25   :  { %v148_v56 = vrot.slane %v132_v28, 2  ;;  %v149_v57 = vrot.slane %v133_v42, 2  ;;  %v150_v58 = vrot.slane %v134_v43, 2  ;;  %v151_v59 = vrot.slane %v135_v44, 2 }
  0x26   :  { %v173_v60 = vmul.f32 %v172_v52, %v1361_v3  ;;  %v152_v61 = vrot.slane %v136_v47, 2  ;;  %v153_v62 = vrot.slane %v137_v48, 2  ;;  %v174_v63 = vmul.f32 %v172_v52, %v1363_v4 }
  0x27   :  { %v175_v0 = vmul.f32 %v172_v52, %v1365_v5  ;;  %v154_v2 = vrot.slane %v138_v50, 2  ;;  %v163_v6 = vadd.f32 %v147_v51, %v121_v35  ;;  %v176_v9 = vmul.f32 %v172_v52, %v1367_v7 }
  0x28   :  { %v177_v13 = vmul.f32 %v172_v52, %v1369_v8  ;;  %v164_v14 = vadd.f32 %v148_v56, %v122_v41  ;;  %v178_v15 = vmul.f32 %v172_v52, %v1372_v10  ;;  %v179_v16 = vmul.f32 %v172_v52, %v1374_v11 }
  0x29   :  { %v180_v17 = vmul.f32 %v172_v52, %v1376_v12  ;;  %v165_v18 = vadd.f32 %v149_v57, %v123_v45  ;;  %v166_v19 = vadd.f32 %v150_v58, %v124_v46  ;;  %v167_v20 = vadd.f32 %v151_v59, %v125_v49 }
  0x2a   :  { %v189_v21 = vrot.slane %v173_v60, 3  ;;  %v168_v22 = vadd.f32 %v152_v61, %v126_v53  ;;  %v190_v23 = vrot.slane %v174_v63, 3  ;;  %v191_v24 = vrot.slane %v175_v0, 3 }
  0x2b   :  { %v214_v25 = vstv %s1402_s15  ;;  %v169_v26 = vadd.f32 %v153_v62, %v127_v54  ;;  %v170_v27 = vadd.f32 %v154_v2, %v128_v55  ;;  %v192_v28 = vrot.slane %v176_v9, 3 }
  0x2c   :  { %v193_v29 = vrot.slane %v177_v13, 3  ;;  %v194_v30 = vrot.slane %v178_v15, 3  ;;  %v195_v31 = vrot.slane %v179_v16, 3  ;;  %v196_v32 = vrot.slane %v180_v17, 3 }
  0x2d   :  { %v215_v33 = vmul.f32 %v214_v25, %v1361_v3  ;;  %v205_v34 = vadd.f32 %v189_v21, %v163_v6  ;;  %v216_v35 = vmul.f32 %v214_v25, %v1363_v4  ;;  %v217_v36 = vmul.f32 %v214_v25, %v1365_v5 }
  0x2e   :  { %v218_v37 = vmul.f32 %v214_v25, %v1367_v7  ;;  %v206_v38 = vadd.f32 %v190_v23, %v164_v14  ;;  %v207_v39 = vadd.f32 %v191_v24, %v165_v18  ;;  %v219_v40 = vmul.f32 %v214_v25, %v1369_v8 }
  0x2f   :  { %v220_v41 = vmul.f32 %v214_v25, %v1372_v10  ;;  %v208_v42 = vadd.f32 %v192_v28, %v166_v19  ;;  %v221_v43 = vmul.f32 %v214_v25, %v1374_v11  ;;  %v222_v44 = vmul.f32 %v214_v25, %v1376_v12 }
  0x30   :  { %v256_v45 = vstv %s1411_s16  ;;  %v209_v46 = vadd.f32 %v193_v29, %v167_v20  ;;  %v210_v47 = vadd.f32 %v194_v30, %v168_v22  ;;  %v211_v48 = vadd.f32 %v195_v31, %v169_v26 }
  0x31   :  { %v231_v49 = vrot.slane %v215_v33, 4  ;;  %v212_v50 = vadd.f32 %v196_v32, %v170_v27  ;;  %v232_v51 = vrot.slane %v216_v35, 4  ;;  %v233_v52 = vrot.slane %v217_v36, 4 }
  0x32   :  { %v234_v53 = vrot.slane %v218_v37, 4  ;;  %v235_v54 = vrot.slane %v219_v40, 4  ;;  %v236_v55 = vrot.slane %v220_v41, 4  ;;  %v257_v56 = vmul.f32 %v256_v45, %v1361_v3 }
  0x33   :  { %v258_v57 = vmul.f32 %v256_v45, %v1363_v4  ;;  %v237_v58 = vrot.slane %v221_v43, 4  ;;  %v238_v59 = vrot.slane %v222_v44, 4  ;;  %v259_v60 = vmul.f32 %v256_v45, %v1365_v5 }
  0x34   :  { %v260_v61 = vmul.f32 %v256_v45, %v1367_v7  ;;  %v247_v62 = vadd.f32 %v231_v49, %v205_v34  ;;  %v261_v63 = vmul.f32 %v256_v45, %v1369_v8  ;;  %v262_v0 = vmul.f32 %v256_v45, %v1372_v10 }
  0x35   :  { %v263_v2 = vmul.f32 %v256_v45, %v1374_v11  ;;  %v248_v6 = vadd.f32 %v232_v51, %v206_v38  ;;  %v249_v9 = vadd.f32 %v233_v52, %v207_v39  ;;  %v250_v13 = vadd.f32 %v234_v53, %v208_v42 }
  0x36   :  { %v264_v14 = vmul.f32 %v256_v45, %v1376_v12  ;;  %v251_v15 = vadd.f32 %v235_v54, %v209_v46  ;;  %v273_v16 = vrot.slane %v257_v56, 5  ;;  %v274_v17 = vrot.slane %v258_v57, 5 }
  0x37   :  { %v298_v18 = vstv %s1423_s17  ;;  %v252_v19 = vadd.f32 %v236_v55, %v210_v47  ;;  %v253_v20 = vadd.f32 %v237_v58, %v211_v48  ;;  %v275_v21 = vrot.slane %v259_v60, 5 }
  0x38   :  { %v276_v22 = vrot.slane %v260_v61, 5  ;;  %v254_v23 = vadd.f32 %v238_v59, %v212_v50  ;;  %v277_v24 = vrot.slane %v261_v63, 5  ;;  %v278_v25 = vrot.slane %v262_v0, 5 }
  0x39   :  { %v279_v26 = vrot.slane %v263_v2, 5  ;;  %v280_v27 = vrot.slane %v264_v14, 5  ;;  %v300_v28 = vmul.f32 %v298_v18, %v1363_v4  ;;  %v301_v29 = vmul.f32 %v298_v18, %v1365_v5 }
  0x3a   :  { %v340_v30 = vstv %s1428_s18  ;;  %v289_v31 = vadd.f32 %v273_v16, %v247_v62  ;;  %v290_v32 = vadd.f32 %v274_v17, %v248_v6  ;;  %v299_v33 = vmul.f32 %v298_v18, %v1361_v3 }
  0x3b   :  { %v302_v34 = vmul.f32 %v298_v18, %v1367_v7  ;;  %v291_v35 = vadd.f32 %v275_v21, %v249_v9  ;;  %v292_v36 = vadd.f32 %v276_v22, %v250_v13  ;;  %v303_v37 = vmul.f32 %v298_v18, %v1369_v8 }
  0x3c   :  { %v304_v38 = vmul.f32 %v298_v18, %v1372_v10  ;;  %v293_v39 = vadd.f32 %v277_v24, %v251_v15  ;;  %v294_v40 = vadd.f32 %v278_v25, %v252_v19  ;;  %v295_v41 = vadd.f32 %v279_v26, %v253_v20 }
  0x3d   :  { %v305_v42 = vmul.f32 %v298_v18, %v1374_v11  ;;  %v316_v43 = vrot.slane %v300_v28, 6  ;;  %v317_v44 = vrot.slane %v301_v29, 6  ;;  %v342_v45 = vmul.f32 %v340_v30, %v1363_v4 }
  0x3e   :  { %v343_v46 = vmul.f32 %v340_v30, %v1365_v5  ;;  %v315_v47 = vrot.slane %v299_v33, 6  ;;  %v318_v48 = vrot.slane %v302_v34, 6  ;;  %v341_v49 = vmul.f32 %v340_v30, %v1361_v3 }
  0x3f   :  { %v344_v50 = vmul.f32 %v340_v30, %v1367_v7  ;;  %v319_v51 = vrot.slane %v303_v37, 6  ;;  %v320_v52 = vrot.slane %v304_v38, 6  ;;  %v345_v53 = vmul.f32 %v340_v30, %v1369_v8 }
  0x40   :  { %v346_v54 = vmul.f32 %v340_v30, %v1372_v10  ;;  %v296_v55 = vadd.f32 %v280_v27, %v254_v23  ;;  %v306_v56 = vmul.f32 %v298_v18, %v1376_v12  ;;  %v321_v57 = vrot.slane %v305_v42, 6 }
  0x41   :  { %v347_v4 = vmul.f32 %v340_v30, %v1374_v11  ;;  %v332_v5 = vadd.f32 %v316_v43, %v290_v32  ;;  %v333_v58 = vadd.f32 %v317_v44, %v291_v35  ;;  %v358_v59 = vrot.slane %v342_v45, 7 }
  0x42   :  { %v359_v60 = vrot.slane %v343_v46, 7  ;;  %v331_v3 = vadd.f32 %v315_v47, %v289_v31  ;;  %v334_v61 = vadd.f32 %v318_v48, %v292_v36  ;;  %v357_v7 = vrot.slane %v341_v49, 7  ;;  %v385_v47 = vld [vmem:[%s1776_s3] sm:$0x1]  ;;  %s1152_s3 = sld [smem:[#allocation2 + $0x8]] }
  0x43   :  { %v360_v62 = vrot.slane %v344_v50, 7  ;;  %v335_v63 = vadd.f32 %v319_v51, %v293_v39  ;;  %v336_v0 = vadd.f32 %v320_v52, %v294_v40  ;;  %v361_v2 = vrot.slane %v345_v53, 7 }
  0x44   :  { %v362_v8 = vrot.slane %v346_v54, 7  ;;  %v322_v6 = vrot.slane %v306_v56, 6  ;;  %v337_v10 = vadd.f32 %v321_v57, %v295_v41  ;;  %v348_v9 = vmul.f32 %v340_v30, %v1376_v12 }
  0x45   :  { %v363_v13 = vrot.slane %v347_v4, 7  ;;  %v1456_v14 = vadd.f32 %v358_v59, %v332_v5  ;;  %v1458_v11 = vadd.f32 %v359_v60, %v333_v58  ;;  %v1460_v15 = vadd.f32 %v357_v7, %v331_v3 }
  0x46   :  { %v1462_v16 = vadd.f32 %v360_v62, %v334_v61  ;;  %v588_v17 = vlaneseq  ;;  %v438_v18 = vstv %s1154_s19  ;;  %v1464_v19 = vadd.f32 %v361_v2, %v335_v63 }
  0x47   :  { %v1466_v20 = vadd.f32 %v362_v8, %v336_v0  ;;  %v440_v21 = vmul.f32 %v438_v18, %v1456_v14  ;;  %v441_v22 = vmul.f32 %v438_v18, %v1458_v11  ;;  %v338_v12 = vadd.f32 %v322_v6, %v296_v55 }
  0x48   :  { %v364_v23 = vrot.slane %v348_v9, 7  ;;  %v1470_v24 = vadd.f32 %v363_v13, %v337_v10  ;;  %v1473_v25 = vshrl.u32 %v588_v17, 7  ;;  %v439_v26 = vmul.f32 %v438_v18, %v1460_v15 }
  0x49   :  { %v442_v27 = vmul.f32 %v438_v18, %v1462_v16  ;;  %v443_v28 = vmul.f32 %v438_v18, %v1464_v19  ;;  %v444_v29 = vmul.f32 %v438_v18, %v1466_v20  ;;  %v459_v32 = vrot.slane %v440_v21, 7 }
  0x4a   :  { %1166 = vset.pattern.permute.xlu2 %v1473_v25  ;;  %v1483_v30 = vadd.s32 8, %v1473_v25  ;;  %1168 = vset.pattern.permute.xlu0 %v1473_v25  ;;  %v445_v31 = vmul.f32 %v438_v18, %v1470_v24  ;;  %v461_v33 = vrot.slane %v441_v22, 6  ;;  %v1487_v35 = vadd.f32 %v364_v23, %v338_v12 }
  0x4b   :  { %v463_v34 = vrot.slane %v442_v27, 5  ;;  %v465_v36 = vrot.slane %v443_v28, 4  ;;  %v460_v37 = vsel %vm410_vm0, %v459_v32, %v439_v26  ;;  %v467_v38 = vrot.slane %v444_v29, 3 }
  0x4c   :  { %1167 = vset.pattern.permute.xlu1 %v1483_v30  ;;  %v446_v39 = vmul.f32 %v438_v18, %v1487_v35  ;;  %v462_v40 = vsel %vm413_vm1, %v461_v33, %v460_v37  ;;  %v469_v43 = vrot.slane %v445_v31, 2  ;;  %v475_v45 = vstv %s1475_s20 }
  0x4d   :  { %v464_v42 = vsel %vm416_vm2, %v463_v34, %v462_v40  ;;  %v476_v50 = vmul.f32 %v475_v45, %v385_v47  ;;  %v387_v58 = vstv %s1152_s3  ;;  %v432_v12 = vstv %s1153_s23  ;;  %v487_v34 = vld [vmem:[#allocation7 + $0x30] sm:$0xff]  ;;  %v482_v40 = vld [vmem:[#allocation7 + $0x8] sm:$0xff]  ;;  %v485_v45 = vld [vmem:[#allocation7 + $0x20] sm:$0xff] }
  0x4e   :  { %v466_v44 = vsel %vm419_vm3, %v465_v36, %v464_v42  ;;  %v471_v48 = vrot.slane %v446_v39, 1  ;;  %v389_v60 = vmul.f32 %v387_v58, %v1456_v14  ;;  %v390_v3 = vmul.f32 %v387_v58, %v1458_v11 }
  0x4f   :  { %v468_v46 = vsel %vm422_vm4, %v467_v38, %v466_v44  ;;  %v478_v52 = vperm.slane %v476_v50, 0  ;;  %v388_v61 = vmul.f32 %v387_v58, %v1460_v15  ;;  %v391_v62 = vmul.f32 %v387_v58, %v1462_v16  ;;  %v481_v38 = vld [vmem:[#allocation7] sm:$0xff] }
  0x50   :  { %v470_v49 = vsel %vm425_vm5, %v469_v43, %v468_v46  ;;  %v409_v7 = vrot.slane %v389_v60, 7  ;;  %v412_v2 = vrot.slane %v390_v3, 6  ;;  %v392_v6 = vmul.f32 %v387_v58, %v1464_v19 }
  0x51   :  { %v472_v51 = vsel %vm428_vm6, %v471_v48, %v470_v49  ;;  %v415_v10 = vrot.slane %v391_v62, 5  ;;  %v393_v13 = vmul.f32 %v387_v58, %v1466_v20  ;;  %v394_v15 = vmul.f32 %v387_v58, %v1470_v24  ;;  %v483_v48 = vld [vmem:[#allocation7 + $0x10] sm:$0xff]  ;;  %v488_v49 = vld [vmem:[#allocation7 + $0x38] sm:$0xff] }
  0x52   :  { %v411_v8 = vsel %vm410_vm0, %v409_v7, %v388_v61  ;;  %v418_v14 = vrot.slane %v392_v6, 4  ;;  %v395_v19 = vmul.f32 %v387_v58, %v1487_v35  ;;  %v433_v26 = vmul.f32 %v432_v12, %v385_v47  ;;  %v486_v61 = vld [vmem:[#allocation7 + $0x28] sm:$0xff]  ;;  %v492_v7 = vld [vmem:[#allocation7 + $0x58] sm:$0xff] }
  0x53   :  { %v414_v9 = vsel %vm413_vm1, %v412_v2, %v411_v8  ;;  %v421_v16 = vrot.slane %v393_v13, 3  ;;  %v424_v21 = vrot.slane %v394_v15, 2 }
  0x54   :  { %v417_v11 = vsel %vm416_vm2, %v415_v10, %v414_v9  ;;  %v427_v20 = vrot.slane %v395_v19, 1  ;;  %v435_v28 = vperm.slane %v433_v26, 0  ;;  %v489_v10 = vld [vmem:[#allocation7 + $0x40] sm:$0xff]  ;;  %v494_v9 = vld [vmem:[#allocation7 + $0x68] sm:$0xff]  ;;  %v491_v19 = vld [vmem:[#allocation7 + $0x50] sm:$0xff] }
  0x55   :  { %v420_v18 = vsel %vm419_vm3, %v418_v14, %v417_v11  ;;  %v493_v26 = vld [vmem:[#allocation7 + $0x60] sm:$0xff] }
  0x56   :  { %v423_v22 = vsel %vm422_vm4, %v421_v16, %v420_v18 }
  0x57   :  { %v426_v23 = vsel %vm425_vm5, %v424_v21, %v423_v22  ;;  %v496_v21 = vld [vmem:[#allocation7 + $0x78] sm:$0xff] }
  0x58   :  { %v429_v24 = vsel %vm428_vm6, %v427_v20, %v426_v23 }
  0x87   :  { %v1493_v41 = vpop.permute.xlu0 %398 }
  0x88   :  { %v431_v27 = vadd.f32 %v429_v24, %v1493_v41 }
  0x8a   :  { %v1535_v29 = vadd.f32 %v435_v28, %v431_v27 }
  0x8c   :  { %v500_v31 = vrot.slane %v1535_v29, 3  ;;  %v505_v37 = vperm.slane %v1535_v29, 0  ;;  %v499_v42 = vrot.slane %v1535_v29, 2  ;;  %v498_v46 = vrot.slane %v1535_v29, 1 }
  0x8d   :  { %v502_v58 = vrot.slane %v1535_v29, 5  ;;  %v504_v11 = vrot.slane %v1535_v29, 7 }
  0x8e   :  { %v508_v33 = vperm.slane %v500_v31, 0  ;;  %v521_v39 = vmul.f32 %v505_v37, %v481_v38  ;;  %v522_v41 = vmul.f32 %v505_v37, %v482_v40  ;;  %v507_v44 = vperm.slane %v499_v42, 0 }
  0x8f   :  { %v510_v3 = vperm.slane %v502_v58, 0  ;;  %v512_v18 = vperm.slane %v504_v11, 0 }
  0x90   :  { %v449_v53 = vpop.permute.xlu0 %448  ;;  %v527_v35 = vmul.f32 %v508_v33, %v487_v34  ;;  %v541_v43 = vsel %vm537_vm7, %v522_v41, 0.0  ;;  %v526_v62 = vmul.f32 %v507_v44, %v486_v61 }
  0x91   :  { %v474_v54 = vadd.f32 %v472_v51, %v449_v53  ;;  %v528_v51 = vmul.f32 %v508_v33, %v488_v49  ;;  %v531_v22 = vmul.f32 %v510_v3, %v491_v19  ;;  %v536_v20 = vmul.f32 %v512_v18, %v496_v21 }
  0x92   :  { %v556_v36 = vsel %vm537_vm7, %v527_v35, 0.0  ;;  %v553_v2 = vsel %vm537_vm7, %v526_v62, 0.0 }
  0x93   :  { %v1504_v55 = vadd.f32 %v478_v52, %v474_v54  ;;  %v501_v52 = vrot.slane %v1535_v29, 4  ;;  %v559_v54 = vsel %vm537_vm7, %v528_v51, 0.0  ;;  %v568_v12 = vsel %vm537_vm7, %v531_v22, 0.0 }
  0x94   :  { %v583_v23 = vsel %vm537_vm7, %v536_v20, 0.0 }
  0x95   :  { %v600_v56 = vperm.slane %v1504_v55, 1  ;;  %v587_v57 = vperm.slane %v1504_v55, 0  ;;  %v652_v4 = vperm.slane %v1504_v55, 5  ;;  %v613_v5 = vperm.slane %v1504_v55, 2 }
  0x96   :  { %v626_v59 = vperm.slane %v1504_v55, 3  ;;  %v665_v63 = vperm.slane %v1504_v55, 6  ;;  %v639_v0 = vperm.slane %v1504_v55, 4  ;;  %v678_v32 = vperm.slane %v1504_v55, 7 }
  0x97   :  { %605 = vperm.xlu0 %1168, %v600_v56   ;;  %598 = vperm.xlu1 %1167, %v587_v57   ;;  %v509_v55 = vperm.slane %v501_v52, 0 }
  0x98   :  { %592 = vperm.xlu2 %1166, %v587_v57   ;;  %v490_v57 = vld [vmem:[#allocation7 + $0x48] sm:$0xff] }
  0x99   :  { %v529_v13 = vmul.f32 %v509_v55, %v489_v10 }
  0x9b   :  { %v562_v15 = vsel %vm537_vm7, %v529_v13, 0.0 }
  0x9f   :  { %657 = vperm.xlu0 %1168, %v652_v4   ;;  %624 = vperm.xlu1 %1167, %v613_v5  }
  0xa0   :  { %1169 = vset.pattern.permute.xlu2 %v1483_v30 }
  0xa7   :  { %1173 = vset.pattern.permute.xlu0 %v1483_v30  ;;  %637 = vperm.xlu1 %1167, %v626_v59  }
  0xa8   :  { %611 = vperm.xlu2 %1169, %v600_v56   ;;  %v484_v56 = vld [vmem:[#allocation7 + $0x18] sm:$0xff] }
  0xaf   :  { %676 = vperm.xlu0 %1173, %v665_v63   ;;  %650 = vperm.xlu1 %1167, %v639_v0  }
  0xb0   :  { %1170 = vset.pattern.permute.xlu2 %v1473_v25 }
  0xb7   :  { %1172 = vset.pattern.permute.xlu1 %v1473_v25  ;;  %1178 = vset.pattern.permute.xlu0 %v1310_v1 }
  0xb8   :  { %618 = vperm.xlu2 %1170, %v613_v5   ;;  %v530_v5 = vmul.f32 %v509_v55, %v490_v57 }
  0xba   :  { %v565_v60 = vsel %vm537_vm7, %v530_v5, 0.0 }
  0xbf   :  { %670 = vperm.xlu1 %1172, %v665_v63   ;;  %v532_v63 = vmul.f32 %v510_v3, %v492_v7 }
  0xc0   :  { %631 = vperm.xlu2 %1170, %v626_v59  }
  0xc1   :  { %v571_v8 = vsel %vm537_vm7, %v532_v63, 0.0 }
  0xc7   :  { %1175 = vset.pattern.permute.xlu1 %v1483_v30 }
  0xc8   :  { %644 = vperm.xlu2 %1170, %v639_v0   ;;  %v503_v0 = vrot.slane %v1535_v29, 6  ;;  %v495_v29 = vld [vmem:[#allocation7 + $0x70] sm:$0xff] }
  0xc9   :  { %v535_v31 = vmul.f32 %v512_v18, %v495_v29 }
  0xca   :  { %v511_v6 = vperm.slane %v503_v0, 0 }
  0xcb   :  { %v580_v33 = vsel %vm537_vm7, %v535_v31, 0.0 }
  0xcc   :  { %v534_v14 = vmul.f32 %v511_v6, %v494_v9  ;;  %v533_v24 = vmul.f32 %v511_v6, %v493_v26  ;;  %v1615_v26 = vand.u32 127, %v588_v17 }
  0xce   :  { %v577_v16 = vsel %vm537_vm7, %v534_v14, 0.0  ;;  %v574_v28 = vsel %vm537_vm7, %v533_v24, 0.0 }
  0xcf   :  { %689 = vperm.xlu1 %1175, %v678_v32  }
  0xd0   :  { %1171 = vset.pattern.permute.xlu2 %v1483_v30  ;;  %v538_v30 = vsel %vm537_vm7, %v521_v39, 0.0 }
  0xd7   :  { %1177 = vset.pattern.permute.xlu1 %v1310_v1 }
  0xd8   :  { %663 = vperm.xlu2 %1171, %v652_v4  }
  0xd9   :  { %557 = vadd.xlane.f32.xlu0 %v556_v36 }
  0xe0   :  { %1174 = vset.pattern.permute.xlu2 %v1473_v25  ;;  %v525_v25 = vmul.f32 %v507_v44, %v485_v45 }
  0xe2   :  { %v550_v47 = vsel %vm537_vm7, %v525_v25, 0.0 }
  0xe8   :  { %683 = vperm.xlu2 %1174, %v678_v32  }
  0xf0   :  { %1176 = vset.pattern.permute.xlu2 %v1310_v1  ;;  %v506_v1 = vperm.slane %v498_v46, 0 }
  0xf2   :  { %v523_v50 = vmul.f32 %v506_v1, %v483_v48  ;;  %v524_v4 = vmul.f32 %v506_v1, %v484_v56  ;;  %v593_v34 = vpop.permute.xlu2 %592 }
  0xf4   :  { %v544_v53 = vsel %vm537_vm7, %v523_v50, 0.0  ;;  %v547_v59 = vsel %vm537_vm7, %v524_v4, 0.0 }
  0xf9   :  { %539 = vadd.xlane.f32.xlu1 %v538_v30 }
 0x101   :  { %542 = vadd.xlane.f32.xlu1 %v541_v43 }
 0x102   :  { %v612_v36 = vpop.permute.xlu2 %611 }
 0x109   :  { %551 = vadd.xlane.f32.xlu1 %v550_v47  ;;  %v599_v27 = vpop.permute.xlu1 %598  ;;  %v606_v41 = vpop.permute.xlu0 %605 }
 0x111   :  { %545 = vadd.xlane.f32.xlu2 %v544_v53  ;;  %560 = vadd.xlane.f32.xlu1 %v559_v54  ;;  %v625_v32 = vpop.permute.xlu1 %624  ;;  %v658_v45 = vpop.permute.xlu0 %657 }
 0x112   :  { %v619_v38 = vpop.permute.xlu2 %618 }
 0x119   :  { %548 = vadd.xlane.f32.xlu2 %v547_v59  ;;  %566 = vadd.xlane.f32.xlu1 %v565_v60  ;;  %v638_v35 = vpop.permute.xlu1 %637 }
 0x11a   :  { %v632_v30 = vpop.permute.xlu2 %631 }
 0x121   :  { %554 = vadd.xlane.f32.xlu2 %v553_v2  ;;  %572 = vadd.xlane.f32.xlu1 %v571_v8  ;;  %v651_v37 = vpop.permute.xlu1 %650  ;;  %v677_v1 = vpop.permute.xlu0 %676 }
 0x122   :  { %v645_v42 = vpop.permute.xlu2 %644 }
 0x129   :  { %563 = vadd.xlane.f32.xlu2 %v562_v15  ;;  %578 = vadd.xlane.f32.xlu1 %v577_v16 }
 0x131   :  { %569 = vadd.xlane.f32.xlu2 %v568_v12  ;;  %584 = vadd.xlane.f32.xlu1 %v583_v23  ;;  %v671_v39 = vpop.permute.xlu1 %670 }
 0x132   :  { %v664_v25 = vpop.permute.xlu2 %663 }
 0x139   :  { %575 = vadd.xlane.f32.xlu2 %v574_v28  ;;  %v1618_v28 = vadd.s32 4294967288, %v1615_v26 }
 0x141   :  { %581 = vadd.xlane.f32.xlu2 %v580_v33  ;;  %v690_v40 = vpop.permute.xlu1 %689 }
 0x142   :  { %v684_v48 = vpop.permute.xlu2 %683 }
 0x14c   :  { %v558_v51 = vpop.xlane.xlu0 %557 }
 0x14d   :  { %v1575_v54 = vadd.f32 %v632_v30, %v558_v51 }
 0x16c   :  { %v540_v43 = vpop.xlane.xlu1 %539 }
 0x16d   :  { %v1566_v44 = vadd.f32 %v593_v34, %v540_v43 }
 0x16f   :  { %740 = vperm.xlu2 %1176, %v1566_v44  }
 0x174   :  { %v543_v46 = vpop.xlane.xlu1 %542 }
 0x175   :  { %v1569_v47 = vadd.f32 %v599_v27, %v543_v46 }
 0x177   :  { %743 = vperm.xlu1 %1177, %v1569_v47  }
 0x17c   :  { %v552_v49 = vpop.xlane.xlu1 %551 }
 0x17d   :  { %v1572_v50 = vadd.f32 %v619_v38, %v552_v49 }
 0x17f   :  { %752 = vperm.xlu1 %1177, %v1572_v50  }
 0x184   :  { %v546_v52 = vpop.xlane.xlu2 %545  ;;  %v561_v53 = vpop.xlane.xlu1 %560 }
 0x185   :  { %v1577_v55 = vadd.f32 %v606_v41, %v546_v52  ;;  %v1581_v4 = vadd.f32 %v638_v35, %v561_v53 }
 0x187   :  { %746 = vperm.xlu0 %1178, %v1577_v55   ;;  %758 = vperm.xlu1 %1177, %v1575_v54  }
 0x18c   :  { %v549_v56 = vpop.xlane.xlu2 %548  ;;  %v567_v57 = vpop.xlane.xlu1 %566 }
 0x18d   :  { %v1583_v5 = vadd.f32 %v612_v36, %v549_v56  ;;  %v1585_v58 = vadd.f32 %v651_v37, %v567_v57 }
 0x18f   :  { %761 = vperm.xlu0 %1178, %v1581_v4   ;;  %749 = vperm.xlu2 %1176, %v1583_v5  }
 0x190   :  { %767 = vperm.xlu1 %1177, %v1585_v58  }
 0x194   :  { %v555_v59 = vpop.xlane.xlu2 %554  ;;  %v573_v7 = vpop.xlane.xlu1 %572 }
 0x195   :  { %v1590_v60 = vadd.f32 %v625_v32, %v555_v59  ;;  %v1596_v63 = vadd.f32 %v664_v25, %v573_v7 }
 0x197   :  { %755 = vperm.xlu2 %1176, %v1590_v60  }
 0x19c   :  { %v564_v3 = vpop.xlane.xlu2 %563  ;;  %v579_v2 = vpop.xlane.xlu1 %578 }
 0x19d   :  { %v1593_v61 = vadd.f32 %v645_v42, %v564_v3  ;;  %v1602_v6 = vadd.f32 %v677_v1, %v579_v2 }
 0x19f   :  { %764 = vperm.xlu2 %1176, %v1593_v61  }
 0x1a4   :  { %v570_v62 = vpop.xlane.xlu2 %569  ;;  %v585_v9 = vpop.xlane.xlu1 %584 }
 0x1a5   :  { %v1598_v0 = vadd.f32 %v658_v45, %v570_v62  ;;  %v1608_v14 = vadd.f32 %v690_v40, %v585_v9 }
 0x1a7   :  { %773 = vperm.xlu2 %1176, %v1596_v63   ;;  %770 = vperm.xlu0 %1178, %v1598_v0  }
 0x1ac   :  { %v576_v8 = vpop.xlane.xlu2 %575 }
 0x1ad   :  { %v1604_v10 = vadd.f32 %v671_v39, %v576_v8 }
 0x1af   :  { %779 = vperm.xlu0 %1178, %v1602_v6   ;;  %776 = vperm.xlu1 %1177, %v1604_v10  }
 0x1b4   :  { %v582_v13 = vpop.xlane.xlu2 %581 }
 0x1b5   :  { %v1610_v11 = vadd.f32 %v684_v48, %v582_v13 }
 0x1b7   :  { %785 = vperm.xlu1 %1177, %v1608_v14   ;;  %782 = vperm.xlu2 %1176, %v1610_v11  }
 0x1c9   :  { %v741_v15 = vpop.permute.xlu2 %740 }
 0x1ca   :  { %v789_v34 = vperm.slane %v741_v15, %v1615_v26 }
 0x1e9   :  { %v744_v16 = vpop.permute.xlu1 %743  ;;  %v750_v18 = vpop.permute.xlu2 %749 }
 0x1ea   :  { %v795_v31 = vperm.slane %v750_v18, %v1618_v28  ;;  %v791_v32 = vperm.slane %v744_v16, %v1618_v28 }
 0x1ec   :  { %v793_v39 = vsel %vm792_vm8, %v791_v32, %v789_v34 }
 0x1f1   :  { %v753_v19 = vpop.permute.xlu1 %752  ;;  %v756_v22 = vpop.permute.xlu2 %755 }
 0x1f2   :  { %v798_v36 = vperm.slane %v756_v22, %v1618_v28  ;;  %v797_v37 = vperm.slane %v753_v19, %v1615_v26 }
 0x1f4   :  { %v799_v25 = vsel %vm792_vm8, %v798_v36, %v797_v37 }
 0x1f9   :  { %v747_v21 = vpop.permute.xlu0 %746  ;;  %v759_v20 = vpop.permute.xlu1 %758 }
 0x1fa   :  { %v765_v23 = vpop.permute.xlu2 %764  ;;  %v794_v29 = vperm.slane %v747_v21, %v1615_v26  ;;  %v800_v30 = vperm.slane %v759_v20, %v1615_v26 }
 0x1fb   :  { %v803_v46 = vperm.slane %v765_v23, %v1615_v26 }
 0x1fc   :  { %v796_v35 = vsel %vm792_vm8, %v795_v31, %v794_v29 }
 0x1fd   :  { %v815_v41 = vsel %vm410_vm0, %v796_v35, %v793_v39 }
 0x1fe   :  { %v816_v49 = vsel %vm413_vm1, %v799_v25, %v815_v41 }
 0x201   :  { %v762_v12 = vpop.permute.xlu0 %761 }
 0x202   :  { %v768_v24 = vpop.permute.xlu1 %767  ;;  %v774_v33 = vpop.permute.xlu2 %773  ;;  %v801_v17 = vperm.slane %v762_v12, %v1618_v28 }
 0x203   :  { %v804_v42 = vperm.slane %v768_v24, %v1618_v28  ;;  %v807_v51 = vperm.slane %v774_v33, %v1618_v28 }
 0x204   :  { %v802_v43 = vsel %vm792_vm8, %v801_v17, %v800_v30 }
 0x205   :  { %v817_v52 = vsel %vm416_vm2, %v802_v43, %v816_v49  ;;  %v805_v53 = vsel %vm792_vm8, %v804_v42, %v803_v46 }
 0x206   :  { %v818_v7 = vsel %vm419_vm3, %v805_v53, %v817_v52 }
 0x211   :  { %v783_v56 = vpop.permute.xlu2 %782 }
 0x212   :  { %v812_v62 = vperm.slane %v783_v56, %v1615_v26 }
 0x219   :  { %v771_v27 = vpop.permute.xlu0 %770 }
 0x21a   :  { %v806_v45 = vperm.slane %v771_v27, %v1615_v26 }
 0x21c   :  { %v808_v57 = vsel %vm792_vm8, %v807_v51, %v806_v45 }
 0x21d   :  { %v819_v8 = vsel %vm422_vm4, %v808_v57, %v818_v7 }
 0x221   :  { %v777_v38 = vpop.permute.xlu1 %776  ;;  %v780_v40 = vpop.permute.xlu0 %779 }
 0x222   :  { %v810_v1 = vperm.slane %v780_v40, %v1618_v28  ;;  %v809_v48 = vperm.slane %v777_v38, %v1615_v26 }
 0x224   :  { %v811_v59 = vsel %vm792_vm8, %v810_v1, %v809_v48 }
 0x225   :  { %v820_v13 = vsel %vm425_vm5, %v811_v59, %v819_v8 }
 0x229   :  { %v786_v3 = vpop.permute.xlu1 %785 }
 0x22a   :  { %v813_v2 = vperm.slane %v786_v3, %v1618_v28 }
 0x22c   :  { %v814_v9 = vsel %vm792_vm8, %v813_v2, %v812_v62 }
 0x22d   :  { %v821_v15 = vsel %vm428_vm6, %v814_v9, %v820_v13 }
 0x22e   :  { %v823_v16 = vsel %vm537_vm7, %v821_v15, -inf }
 0x22f   :  { %824 = vmax.xlane.f32.xlu0 %v823_v16 }
 0x2a2   :  { %v1652_v18 = vpop.xlane.xlu0 %824 }
 0x2a3   :  { %v832_v19 = vperm.slane %v1652_v18, 5  ;;  %v827_v21 = vperm.slane %v1652_v18, 0  ;;  %v834_v23 = vperm.slane %v1652_v18, 7  ;;  %v828_v24 = vperm.slane %v1652_v18, 1 }
 0x2a4   :  { %v829_v36 = vperm.slane %v1652_v18, 2  ;;  %v830_v43 = vperm.slane %v1652_v18, 3  ;;  %v831_v52 = vperm.slane %v1652_v18, 4  ;;  %v833_v62 = vperm.slane %v1652_v18, 6 }
 0x2a5   :  { %v853_v22 = vsub.f32 %v1598_v0, %v832_v19  ;;  %v844_v20 = vsub.f32 %v1569_v47, %v827_v21  ;;  %v843_v12 = vsub.f32 %v1566_v44, %v827_v21  ;;  %v858_v32 = vsub.f32 %v1608_v14, %v834_v23 }
 0x2a6   :  { %v846_v33 = vsub.f32 %v1583_v5, %v828_v24  ;;  %v845_v34 = vsub.f32 %v1577_v55, %v828_v24  ;;  %v848_v40 = vsub.f32 %v1590_v60, %v829_v36  ;;  %v847_v41 = vsub.f32 %v1572_v50, %v829_v36 }
 0x2a7   :  { %v879_v27 = vmul.f32 1.442695, %v853_v22  ;;  %v861_v29 = vmul.f32 1.442695, %v844_v20  ;;  %v859_v31 = vmul.f32 1.442695, %v843_v12  ;;  %v850_v48 = vsub.f32 %v1581_v4, %v830_v43 }
 0x2a8   :  { %v889_v35 = vmul.f32 1.442695, %v858_v32  ;;  %v865_v17 = vmul.f32 1.442695, %v846_v33  ;;  %v863_v38 = vmul.f32 1.442695, %v845_v34  ;;  %v849_v49 = vsub.f32 %v1575_v54, %v830_v43 }
 0x2a9   :  { %1179 = vpow2.f32 %v879_v27  ;;  %v869_v42 = vmul.f32 1.442695, %v848_v40  ;;  %v867_v25 = vmul.f32 1.442695, %v847_v41  ;;  %v873_v51 = vmul.f32 1.442695, %v850_v48 }
 0x2aa   :  { %1181 = vpow2.f32 %v861_v29  ;;  %v871_v53 = vmul.f32 1.442695, %v849_v49  ;;  %v852_v59 = vsub.f32 %v1585_v58, %v831_v52  ;;  %v851_v3 = vsub.f32 %v1593_v61, %v831_v52 }
 0x2ab   :  { %1183 = vpow2.f32 %v859_v31  ;;  %v855_v13 = vsub.f32 %v1604_v10, %v833_v62  ;;  %v854_v15 = vsub.f32 %v1596_v63, %v832_v19  ;;  %v857_v12 = vsub.f32 %v1610_v11, %v834_v23 }
 0x2ac   :  { %1185 = vpow2.f32 %v889_v35  ;;  %v877_v7 = vmul.f32 1.442695, %v852_v59  ;;  %v875_v2 = vmul.f32 1.442695, %v851_v3  ;;  %v856_v24 = vsub.f32 %v1602_v6, %v833_v62 }
 0x2ad   :  { %1187 = vpow2.f32 %v865_v17  ;;  %v883_v16 = vmul.f32 1.442695, %v855_v13  ;;  %v881_v21 = vmul.f32 1.442695, %v854_v15  ;;  %v887_v27 = vmul.f32 1.442695, %v857_v12 }
 0x2ae   :  { %1189 = vpow2.f32 %v863_v38  ;;  %v885_v29 = vmul.f32 1.442695, %v856_v24 }
 0x2af   :  { %v1180_v37 = vpop.eup %1179  ;;  %1191 = vpow2.f32 %v869_v42 }
 0x2b0   :  { %v1182_v39 = vpop.eup %1181  ;;  %938 = vperm.xlu0 %1178, %v1180_v37   ;;  %1193 = vpow2.f32 %v867_v25 }
 0x2b1   :  { %v1184_v30 = vpop.eup %1183  ;;  %911 = vperm.xlu1 %1177, %v1182_v39   ;;  %1195 = vpow2.f32 %v873_v51 }
 0x2b2   :  { %908 = vperm.xlu2 %1176, %v1184_v30   ;;  %v1186_v45 = vpop.eup %1185  ;;  %1197 = vpow2.f32 %v871_v53 }
 0x2b3   :  { %v1188_v46 = vpop.eup %1187  ;;  %1199 = vpow2.f32 %v877_v7 }
 0x2b4   :  { %v1190_v1 = vpop.eup %1189  ;;  %1201 = vpow2.f32 %v875_v2 }
 0x2b5   :  { %v1192_v56 = vpop.eup %1191  ;;  %1203 = vpow2.f32 %v883_v16 }
 0x2b6   :  { %v1194_v57 = vpop.eup %1193  ;;  %1205 = vpow2.f32 %v881_v21 }
 0x2b7   :  { %v1196_v8 = vpop.eup %1195  ;;  %1207 = vpow2.f32 %v887_v27 }
 0x2b8   :  { %953 = vperm.xlu0 %1178, %v1186_v45   ;;  %v1198_v9 = vpop.eup %1197  ;;  %1209 = vpow2.f32 %v885_v29 }
 0x2b9   :  { %917 = vperm.xlu1 %1177, %v1188_v46   ;;  %v1200_v22 = vpop.eup %1199 }
 0x2ba   :  { %914 = vperm.xlu2 %1176, %v1190_v1   ;;  %v1202_v20 = vpop.eup %1201 }
 0x2bb   :  { %v1204_v31 = vpop.eup %1203 }
 0x2bc   :  { %v1206_v32 = vpop.eup %1205 }
 0x2bd   :  { %v1208_v19 = vpop.eup %1207 }
 0x2be   :  { %v1210_v33 = vpop.eup %1209 }
 0x2c1   :  { %923 = vperm.xlu1 %1177, %v1192_v56  }
 0x2c2   :  { %920 = vperm.xlu2 %1176, %v1194_v57  }
 0x2c9   :  { %929 = vperm.xlu1 %1177, %v1196_v8  }
 0x2ca   :  { %926 = vperm.xlu2 %1176, %v1198_v9  }
 0x2d1   :  { %935 = vperm.xlu1 %1177, %v1200_v22  }
 0x2d2   :  { %932 = vperm.xlu2 %1176, %v1202_v20  }
 0x2d9   :  { %944 = vperm.xlu1 %1177, %v1204_v31  }
 0x2da   :  { %941 = vperm.xlu2 %1176, %v1206_v32  }
 0x2e1   :  { %950 = vperm.xlu1 %1177, %v1208_v19  }
 0x2e2   :  { %947 = vperm.xlu2 %1176, %v1210_v33  }
 0x30c   :  { %v909_v34 = vpop.permute.xlu2 %908 }
 0x30d   :  { %v955_v52 = vperm.slane %v909_v34, %v1615_v26 }
 0x314   :  { %v915_v35 = vpop.permute.xlu2 %914 }
 0x315   :  { %v958_v25 = vperm.slane %v915_v35, %v1615_v26 }
 0x31c   :  { %v921_v36 = vpop.permute.xlu2 %920 }
 0x31d   :  { %v961_v48 = vperm.slane %v921_v36, %v1615_v26 }
 0x322   :  { %v939_v42 = vpop.permute.xlu0 %938 }
 0x323   :  { %v912_v17 = vpop.permute.xlu1 %911  ;;  %v970_v20 = vperm.slane %v939_v42, %v1615_v26 }
 0x324   :  { %v927_v37 = vpop.permute.xlu2 %926  ;;  %v956_v46 = vperm.slane %v912_v17, %v1618_v28 }
 0x325   :  { %v964_v53 = vperm.slane %v927_v37, %v1615_v26 }
 0x326   :  { %v957_v3 = vsel %vm792_vm8, %v956_v46, %v955_v52 }
 0x32a   :  { %v954_v16 = vpop.permute.xlu0 %953 }
 0x32b   :  { %v918_v23 = vpop.permute.xlu1 %917  ;;  %v977_v29 = vperm.slane %v954_v16, %v1618_v28 }
 0x32c   :  { %v933_v39 = vpop.permute.xlu2 %932  ;;  %v959_v43 = vperm.slane %v918_v23, %v1618_v28 }
 0x32d   :  { %v967_v57 = vperm.slane %v933_v39, %v1615_v26 }
 0x32e   :  { %v960_v56 = vsel %vm792_vm8, %v959_v43, %v958_v25 }
 0x32f   :  { %v979_v2 = vsel %vm410_vm0, %v960_v56, %v957_v3 }
 0x333   :  { %v924_v38 = vpop.permute.xlu1 %923 }
 0x334   :  { %v942_v41 = vpop.permute.xlu2 %941  ;;  %v962_v45 = vperm.slane %v924_v38, %v1618_v28 }
 0x335   :  { %v971_v15 = vperm.slane %v942_v41, %v1618_v28 }
 0x336   :  { %v963_v59 = vsel %vm792_vm8, %v962_v45, %v961_v48 }
 0x337   :  { %v980_v13 = vsel %vm413_vm1, %v963_v59, %v979_v2  ;;  %v972_v31 = vsel %vm792_vm8, %v971_v15, %v970_v20 }
 0x33b   :  { %v930_v30 = vpop.permute.xlu1 %929 }
 0x33c   :  { %v965_v1 = vperm.slane %v930_v30, %v1618_v28  ;;  %v948_v62 = vpop.permute.xlu2 %947 }
 0x33d   :  { %v974_v22 = vperm.slane %v948_v62, %v1618_v28 }
 0x33e   :  { %v966_v7 = vsel %vm792_vm8, %v965_v1, %v964_v53 }
 0x33f   :  { %v981_v21 = vsel %vm416_vm2, %v966_v7, %v980_v13 }
 0x343   :  { %v936_v40 = vpop.permute.xlu1 %935 }
 0x344   :  { %v968_v49 = vperm.slane %v936_v40, %v1618_v28 }
 0x346   :  { %v969_v8 = vsel %vm792_vm8, %v968_v49, %v967_v57 }
 0x347   :  { %v982_v12 = vsel %vm419_vm3, %v969_v8, %v981_v21 }
 0x348   :  { %v983_v19 = vsel %vm422_vm4, %v972_v31, %v982_v12 }
 0x34b   :  { %v945_v51 = vpop.permute.xlu1 %944 }
 0x34c   :  { %v973_v9 = vperm.slane %v945_v51, %v1615_v26 }
 0x34e   :  { %v975_v24 = vsel %vm792_vm8, %v974_v22, %v973_v9 }
 0x34f   :  { %v984_v34 = vsel %vm425_vm5, %v975_v24, %v983_v19 }
 0x353   :  { %v951_v27 = vpop.permute.xlu1 %950 }
 0x354   :  { %v976_v32 = vperm.slane %v951_v27, %v1615_v26 }
 0x356   :  { %v978_v33 = vsel %vm792_vm8, %v977_v29, %v976_v32 }
 0x357   :  { %v985_v35 = vsel %vm428_vm6, %v978_v33, %v984_v34 }
 0x358   :  { %v987_v17 = vsel %vm537_vm7, %v985_v35, 0.0 }
 0x359   :  { %988 = vadd.xlane.f32.xlu2 %v987_v17 }
 0x3cc   :  { %v989_v36 = vpop.xlane.xlu2 %988 }
 0x3cd   :  { %1211 = vlog2.f32 %v989_v36 }
 0x3d3   :  { %v1212_v23 = vpop.eup %1211 }
 0x3d4   :  { %v991_v37 = vmul.f32 0.6931472, %v1212_v23 }
 0x3d6   :  { %v992_v38 = vadd.f32 %v991_v37, %v1652_v18 }
 0x3d8   :  { %v999_v39 = vperm.slane %v992_v38, 5  ;;  %v994_v30 = vperm.slane %v992_v38, 0  ;;  %v995_v43 = vperm.slane %v992_v38, 1  ;;  %v996_v46 = vperm.slane %v992_v38, 2 }
 0x3d9   :  { %v998_v48 = vperm.slane %v992_v38, 4  ;;  %v1000_v49 = vperm.slane %v992_v38, 6  ;;  %v1001_v51 = vperm.slane %v992_v38, 7 }
 0x3da   :  { %v1021_v40 = vsub.f32 %v1596_v63, %v999_v39  ;;  %v1011_v41 = vsub.f32 %v1569_v47, %v994_v30  ;;  %v1010_v42 = vsub.f32 %v1566_v44, %v994_v30  ;;  %v1013_v45 = vsub.f32 %v1583_v5, %v995_v43 }
 0x3db   :  { %v1012_v25 = vsub.f32 %v1577_v55, %v995_v43  ;;  %v1015_v18 = vsub.f32 %v1590_v60, %v996_v46  ;;  %v1014_v1 = vsub.f32 %v1572_v50, %v996_v46  ;;  %v997_v47 = vperm.slane %v992_v38, 3  ;;  %v1026_v38 = vld [vmem:[%s1778_s5] sm:$0xff] }
 0x3dc   :  { %1078 = vperm.xlu2 %1176, %v1021_v40   ;;  %1048 = vperm.xlu0 %1178, %v1011_v41   ;;  %v1019_v5 = vsub.f32 %v1585_v58, %v998_v48  ;;  %v1018_v55 = vsub.f32 %v1593_v61, %v998_v48  ;;  %v1022_v60 = vsub.f32 %v1604_v10, %v1000_v49  ;;  %vm1027_vm9 = vcmp.ne.s32.totalorder %v1026_v38, 0 }
 0x3dd   :  { %1045 = vperm.xlu1 %1177, %v1010_v42   ;;  %v1017_v44 = vsub.f32 %v1581_v4, %v997_v47  ;;  %v1016_v63 = vsub.f32 %v1575_v54, %v997_v47  ;;  %v1020_v50 = vsub.f32 %v1598_v0, %v999_v39  ;;  %v1024_v4 = vsub.f32 %v1610_v11, %v1001_v51 }
 0x3de   :  { %v1023_v54 = vsub.f32 %v1602_v6, %v1000_v49  ;;  %v1025_v58 = vsub.f32 %v1608_v14, %v1001_v51 }
 0x3e4   :  { %1054 = vperm.xlu0 %1178, %v1013_v45  }
 0x3e5   :  { %1051 = vperm.xlu1 %1177, %v1012_v25  }
 0x3ec   :  { %1060 = vperm.xlu0 %1178, %v1015_v18  }
 0x3ed   :  { %1057 = vperm.xlu1 %1177, %v1014_v1  }
 0x3f4   :  { %1066 = vperm.xlu0 %1178, %v1017_v44  }
 0x3f5   :  { %1063 = vperm.xlu1 %1177, %v1016_v63  }
 0x3fc   :  { %1072 = vperm.xlu0 %1178, %v1019_v5  }
 0x3fd   :  { %1069 = vperm.xlu1 %1177, %v1018_v55  }
 0x404   :  { %1081 = vperm.xlu0 %1178, %v1022_v60  }
 0x405   :  { %1075 = vperm.xlu1 %1177, %v1020_v50  }
 0x40c   :  { %1087 = vperm.xlu0 %1178, %v1024_v4  }
 0x40d   :  { %1084 = vperm.xlu1 %1177, %v1023_v54  }
 0x415   :  { %1090 = vperm.xlu1 %1177, %v1025_v58  }
 0x436   :  { %v1079_v22 = vpop.permute.xlu2 %1078 }
 0x437   :  { %v1108_v32 = vperm.slane %v1079_v22, %v1618_v28 }
 0x44e   :  { %v1049_v61 = vpop.permute.xlu0 %1048 }
 0x44f   :  { %v1046_v52 = vpop.permute.xlu1 %1045  ;;  %v1093_v13 = vperm.slane %v1049_v61, %v1618_v28 }
 0x450   :  { %v1092_v15 = vperm.slane %v1046_v52, %v1615_v26 }
 0x452   :  { %v1094_v19 = vsel %vm792_vm8, %v1093_v13, %v1092_v15 }
 0x456   :  { %v1055_v53 = vpop.permute.xlu0 %1054 }
 0x457   :  { %v1052_v56 = vpop.permute.xlu1 %1051  ;;  %v1096_v11 = vperm.slane %v1055_v53, %v1618_v28 }
 0x458   :  { %v1095_v6 = vperm.slane %v1052_v56, %v1615_v26 }
 0x45a   :  { %v1097_v24 = vsel %vm792_vm8, %v1096_v11, %v1095_v6 }
 0x45b   :  { %v1116_v34 = vsel %vm410_vm0, %v1097_v24, %v1094_v19 }
 0x45e   :  { %v1061_v57 = vpop.permute.xlu0 %1060 }
 0x45f   :  { %v1058_v10 = vpop.permute.xlu1 %1057  ;;  %v1099_v8 = vperm.slane %v1061_v57, %v1618_v28 }
 0x460   :  { %v1098_v14 = vperm.slane %v1058_v10, %v1615_v26 }
 0x462   :  { %v1100_v29 = vsel %vm792_vm8, %v1099_v8, %v1098_v14 }
 0x463   :  { %v1117_v23 = vsel %vm413_vm1, %v1100_v29, %v1116_v34 }
 0x466   :  { %v1067_v59 = vpop.permute.xlu0 %1066 }
 0x467   :  { %v1064_v0 = vpop.permute.xlu1 %1063  ;;  %v1102_v16 = vperm.slane %v1067_v59, %v1618_v28 }
 0x468   :  { %v1101_v21 = vperm.slane %v1064_v0, %v1615_v26 }
 0x46a   :  { %v1103_v33 = vsel %vm792_vm8, %v1102_v16, %v1101_v21 }
 0x46b   :  { %v1118_v39 = vsel %vm416_vm2, %v1103_v33, %v1117_v23 }
 0x46e   :  { %v1073_v7 = vpop.permute.xlu0 %1072 }
 0x46f   :  { %v1070_v3 = vpop.permute.xlu1 %1069  ;;  %v1105_v20 = vperm.slane %v1073_v7, %v1618_v28 }
 0x470   :  { %v1104_v12 = vperm.slane %v1070_v3, %v1615_v26 }
 0x472   :  { %v1106_v35 = vsel %vm792_vm8, %v1105_v20, %v1104_v12 }
 0x473   :  { %v1119_v41 = vsel %vm419_vm3, %v1106_v35, %v1118_v39 }
 0x476   :  { %v1082_v2 = vpop.permute.xlu0 %1081 }
 0x477   :  { %v1076_v62 = vpop.permute.xlu1 %1075  ;;  %v1110_v17 = vperm.slane %v1082_v2, %v1615_v26 }
 0x478   :  { %v1107_v27 = vperm.slane %v1076_v62, %v1615_v26 }
 0x47a   :  { %v1109_v37 = vsel %vm792_vm8, %v1108_v32, %v1107_v27 }
 0x47b   :  { %v1120_v45 = vsel %vm422_vm4, %v1109_v37, %v1119_v41 }
 0x47e   :  { %v1088_v36 = vpop.permute.xlu0 %1087 }
 0x47f   :  { %v1085_v9 = vpop.permute.xlu1 %1084  ;;  %v1113_v42 = vperm.slane %v1088_v36, %v1615_v26 }
 0x480   :  { %v1111_v31 = vperm.slane %v1085_v9, %v1618_v28 }
 0x482   :  { %v1112_v30 = vsel %vm792_vm8, %v1111_v31, %v1110_v17 }
 0x483   :  { %v1121_v46 = vsel %vm425_vm5, %v1112_v30, %v1120_v45 }
 0x487   :  { %v1091_v40 = vpop.permute.xlu1 %1090 }
 0x488   :  { %v1114_v43 = vperm.slane %v1091_v40, %v1618_v28 }
 0x48a   :  { %v1115_v25 = vsel %vm792_vm8, %v1114_v43, %v1113_v42 }
 0x48b   :  { %v1122_v18 = vsel %vm428_vm6, %v1115_v25, %v1121_v46 }
 0x48c   :  { %v1124_v26 = vsel %vm1027_vm9, -1e+08, %v1122_v18 }
 0x48d   :  { %1125 = vst.msk [vmem:[#allocation9] sm:$0xff] %vm537_vm7, %v1124_v26 }
 0x48e   :  { %1136 = dma.vmem_to_hbm [thread:$0]  %s1132_s27, 128, %s1134_s30, [#allocation4]  }
 0x48f   :  { %1303 = dma.done.wait [#allocation4], 128  }
 0x490   :  { %1304 = vsyncadd [#allocation4], 4294967168 }
 0x491   :  { %1141 = vsyncpa [#allocation3], 1 }
 0x492   :  { %1142 = vsyncpa [#allocation8], 1 }
 0x493   :  { %1143 = vsyncpa [#allocation4], 1 }
 0x494   :  { %1144 = vsyncpa [#allocation5], 1 }

</bundles_post_ra>
